<compile_context>
chip_gen: v7x
topology: tpu7x:2x2x1
jax: 0.10.0
libtpu: 0.0.40
codegen_flags: <defaults>
</compile_context>

<pallas_src>
import functools

import jax
import jax.numpy as jnp
from jax.experimental import pallas as pl
from jax.experimental.pallas import tpu as pltpu  # noqa: F401  (TPU backend)


def _net_kernel(x_ref, p_ref, o_ref, *, n_in, n_hidden, n_out):
    x = x_ref[...]          # (B, n_in)   f32
    p = p_ref[...]          # (n_in + 1 + n_hidden + 1, max(n_hidden, n_out)) f32

    # Static slices of the packed parameter slab (trace-time constants).
    w1 = p[0:n_in, 0:n_hidden]                                   # (n_in, n_hidden) == W1.T
    b1 = p[n_in:n_in + 1, 0:n_hidden]                            # (1, n_hidden)
    w2 = p[n_in + 1:n_in + 1 + n_hidden, 0:n_out]                # (n_hidden, n_out) == W2.T
    b2 = p[n_in + 1 + n_hidden:n_in + 2 + n_hidden, 0:n_out]     # (1, n_out)

    # Layer 1: hidden = relu(x @ W1.T + b1).  K = n_in is tiny -> unrolled
    # broadcast-FMA on the VPU instead of a padded MXU pass.
    h = b1
    for k in range(n_in):                                        # static unroll
        h = h + x[:, k:k + 1] * w1[k:k + 1, :]                   # (B,1)*(1,H) -> (B,H)
    h = jnp.maximum(h, 0.0)                                      # F.relu

    # Layer 2: out = hidden @ W2.T + b2.  N = n_out is tiny -> unrolled
    # FMA chain over the n_hidden terms, also on the VPU.
    y = b2
    for k in range(n_hidden):                                    # static unroll
        y = y + h[:, k:k + 1] * w2[k:k + 1, :]                   # (B,1)*(1,O) -> (B,O)

    o_ref[...] = y.astype(o_ref.dtype)


def pack_params(w1, b1, w2, b2):
    """Pack PyTorch-layout Linear params into one f32 slab (done ONCE, not per
    call, so no per-call transpose/relayout XLA ops are emitted).

    Row layout of the slab:
      [0 : n_in]                   W1.T   (n_in, n_hidden)
      [n_in]                       b1     (n_hidden,)
      [n_in+1 : n_in+1+n_hidden]   W2.T   (n_hidden, n_out)
      [n_in+1+n_hidden]            b2     (n_out,)
    Columns are padded to max(n_hidden, n_out).
    """
    n_hidden, n_in = w1.shape
    n_out = w2.shape[0]
    cols = max(n_hidden, n_out)
    rows = n_in + 1 + n_hidden + 1

    slab = jnp.zeros((rows, cols), jnp.float32)
    slab = slab.at[0:n_in, 0:n_hidden].set(jnp.asarray(w1, jnp.float32).T)
    slab = slab.at[n_in, 0:n_hidden].set(jnp.asarray(b1, jnp.float32))
    slab = slab.at[n_in + 1:n_in + 1 + n_hidden, 0:n_out].set(
        jnp.asarray(w2, jnp.float32).T)
    slab = slab.at[n_in + 1 + n_hidden, 0:n_out].set(jnp.asarray(b2, jnp.float32))
    return slab, (n_in, n_hidden, n_out)


def net_forward(x, packed_params, dims):
    """x: (B, n_in) f32; packed_params: slab from pack_params; dims: (n_in, n_hidden, n_out)."""
    n_in, n_hidden, n_out = dims
    B = x.shape[0]
    assert x.shape[1] == n_in

    # Full-array blocks, single grid point: everything fits trivially in VMEM.
    full = lambda shape: pl.BlockSpec(shape, lambda: tuple(0 for _ in shape))

    kernel = functools.partial(
        _net_kernel, n_in=n_in, n_hidden=n_hidden, n_out=n_out)

    return pl.pallas_call(
        kernel,
        out_shape=jax.ShapeDtypeStruct((B, n_out), jnp.float32),
        grid=(),
        in_specs=[full((B, n_in)), full(packed_params.shape)],
        out_specs=full((B, n_out)),
    )(x.astype(jnp.float32), packed_params)


def _torch_linear_init(key, fan_out, fan_in):
    """Deterministic stand-in for torch.nn.Linear default init:
       U(-1/sqrt(fan_in), 1/sqrt(fan_in)) for both weight and bias."""
    kw, kb = jax.random.split(key)
    bound = 1.0 / jnp.sqrt(jnp.float32(fan_in))
    w = jax.random.uniform(kw, (fan_out, fan_in), jnp.float32, -bound, bound)
    b = jax.random.uniform(kb, (fan_out,), jnp.float32, -bound, bound)
    return w, b


if __name__ == "__main__":
    # Shapes consistent with the original script: Net(n_in=2, n_hidden=10, n_out=2),
    # x built by concatenating two Gaussian clusters of 2-D points.
    n_in, n_hidden, n_out = 2, 10, 2
    batch = 16

    key = jax.random.PRNGKey(0)
    k_x0, k_x1, k_l1, k_l2 = jax.random.split(key, 4)

    # Two clusters around +2 and -2, like torch.normal(±2*ones, 1).
    half = batch // 2
    x0 = 2.0 + jax.random.normal(k_x0, (half, n_in), jnp.float32)
    x1 = -2.0 + jax.random.normal(k_x1, (half, n_in), jnp.float32)
    x = jnp.concatenate([x0, x1], axis=0)  # (batch, n_in)

    w1, b1 = _torch_linear_init(k_l1, n_hidden, n_in)
    w2, b2 = _torch_linear_init(k_l2, n_out, n_hidden)

    # One-time parameter packing (amortized; not on the per-call path).
    params, dims = pack_params(w1, b1, w2, b2)

    out = net_forward(x, params, dims)
    jax.block_until_ready(out)

    # Pure-JAX reference check of the same math.
    ref = jnp.maximum(x @ w1.T + b1, 0.0) @ w2.T + b2
    assert out.shape == (batch, n_out)
    assert jnp.allclose(out, ref, atol=1e-5, rtol=1e-5)

    print("KERNEL_OK")
</pallas_src>

<mosaic_0001>
module attributes {stable_mosaic.version = 11 : i64} {
  func.func @_net_kernel(%arg0: memref<16x2xf32, #tpu.memory_space<vmem>>, %arg1: memref<14x10xf32, #tpu.memory_space<vmem>>, %arg2: memref<16x2xf32, #tpu.memory_space<vmem>>) attributes {dimension_semantics = [], scalar_prefetch = 0 : i64, scratch_operands = 0 : i64, tpu.core_type = #tpu.core_type<tc>} {
    %c0 = arith.constant 0 : index
    %c0_0 = arith.constant 0 : index
    %0 = vector.load %arg0[%c0, %c0_0] : memref<16x2xf32, #tpu.memory_space<vmem>>, vector<16x2xf32>
    %c0_1 = arith.constant 0 : index
    %c0_2 = arith.constant 0 : index
    %1 = vector.load %arg1[%c0_1, %c0_2] : memref<14x10xf32, #tpu.memory_space<vmem>>, vector<14x10xf32>
    %2 = vector.extract_strided_slice %1 {offsets = [0, 0], sizes = [2, 10], strides = [1, 1]} : vector<14x10xf32> to vector<2x10xf32>
    %3 = vector.extract_strided_slice %1 {offsets = [2, 0], sizes = [1, 10], strides = [1, 1]} : vector<14x10xf32> to vector<1x10xf32>
    %4 = vector.extract_strided_slice %1 {offsets = [3, 0], sizes = [10, 2], strides = [1, 1]} : vector<14x10xf32> to vector<10x2xf32>
    %5 = vector.extract_strided_slice %1 {offsets = [13, 0], sizes = [1, 2], strides = [1, 1]} : vector<14x10xf32> to vector<1x2xf32>
    %6 = vector.extract_strided_slice %0 {offsets = [0, 0], sizes = [16, 1], strides = [1, 1]} : vector<16x2xf32> to vector<16x1xf32>
    %7 = vector.extract_strided_slice %2 {offsets = [0, 0], sizes = [1, 10], strides = [1, 1]} : vector<2x10xf32> to vector<1x10xf32>
    %8 = vector.broadcast %6 : vector<16x1xf32> to vector<16x10xf32>
    %9 = vector.broadcast %7 : vector<1x10xf32> to vector<16x10xf32>
    %10 = arith.mulf %8, %9 : vector<16x10xf32>
    %11 = vector.broadcast %3 : vector<1x10xf32> to vector<16x10xf32>
    %12 = arith.addf %11, %10 : vector<16x10xf32>
    %13 = vector.extract_strided_slice %0 {offsets = [0, 1], sizes = [16, 1], strides = [1, 1]} : vector<16x2xf32> to vector<16x1xf32>
    %14 = vector.extract_strided_slice %2 {offsets = [1, 0], sizes = [1, 10], strides = [1, 1]} : vector<2x10xf32> to vector<1x10xf32>
    %15 = vector.broadcast %13 : vector<16x1xf32> to vector<16x10xf32>
    %16 = vector.broadcast %14 : vector<1x10xf32> to vector<16x10xf32>
    %17 = arith.mulf %15, %16 : vector<16x10xf32>
    %18 = arith.addf %12, %17 : vector<16x10xf32>
    %cst = arith.constant 0.000000e+00 : f32
    %19 = vector.broadcast %cst : f32 to vector<16x10xf32>
    %20 = arith.maximumf %18, %19 : vector<16x10xf32>
    %21 = vector.extract_strided_slice %20 {offsets = [0, 0], sizes = [16, 1], strides = [1, 1]} : vector<16x10xf32> to vector<16x1xf32>
    %22 = vector.extract_strided_slice %4 {offsets = [0, 0], sizes = [1, 2], strides = [1, 1]} : vector<10x2xf32> to vector<1x2xf32>
    %23 = vector.broadcast %21 : vector<16x1xf32> to vector<16x2xf32>
    %24 = vector.broadcast %22 : vector<1x2xf32> to vector<16x2xf32>
    %25 = arith.mulf %23, %24 : vector<16x2xf32>
    %26 = vector.broadcast %5 : vector<1x2xf32> to vector<16x2xf32>
    %27 = arith.addf %26, %25 : vector<16x2xf32>
    %28 = vector.extract_strided_slice %20 {offsets = [0, 1], sizes = [16, 1], strides = [1, 1]} : vector<16x10xf32> to vector<16x1xf32>
    %29 = vector.extract_strided_slice %4 {offsets = [1, 0], sizes = [1, 2], strides = [1, 1]} : vector<10x2xf32> to vector<1x2xf32>
    %30 = vector.broadcast %28 : vector<16x1xf32> to vector<16x2xf32>
    %31 = vector.broadcast %29 : vector<1x2xf32> to vector<16x2xf32>
    %32 = arith.mulf %30, %31 : vector<16x2xf32>
    %33 = arith.addf %27, %32 : vector<16x2xf32>
    %34 = vector.extract_strided_slice %20 {offsets = [0, 2], sizes = [16, 1], strides = [1, 1]} : vector<16x10xf32> to vector<16x1xf32>
    %35 = vector.extract_strided_slice %4 {offsets = [2, 0], sizes = [1, 2], strides = [1, 1]} : vector<10x2xf32> to vector<1x2xf32>
    %36 = vector.broadcast %34 : vector<16x1xf32> to vector<16x2xf32>
    %37 = vector.broadcast %35 : vector<1x2xf32> to vector<16x2xf32>
    %38 = arith.mulf %36, %37 : vector<16x2xf32>
    %39 = arith.addf %33, %38 : vector<16x2xf32>
    %40 = vector.extract_strided_slice %20 {offsets = [0, 3], sizes = [16, 1], strides = [1, 1]} : vector<16x10xf32> to vector<16x1xf32>
    %41 = vector.extract_strided_slice %4 {offsets = [3, 0], sizes = [1, 2], strides = [1, 1]} : vector<10x2xf32> to vector<1x2xf32>
    %42 = vector.broadcast %40 : vector<16x1xf32> to vector<16x2xf32>
    %43 = vector.broadcast %41 : vector<1x2xf32> to vector<16x2xf32>
    %44 = arith.mulf %42, %43 : vector<16x2xf32>
    %45 = arith.addf %39, %44 : vector<16x2xf32>
    %46 = vector.extract_strided_slice %20 {offsets = [0, 4], sizes = [16, 1], strides = [1, 1]} : vector<16x10xf32> to vector<16x1xf32>
    %47 = vector.extract_strided_slice %4 {offsets = [4, 0], sizes = [1, 2], strides = [1, 1]} : vector<10x2xf32> to vector<1x2xf32>
    %48 = vector.broadcast %46 : vector<16x1xf32> to vector<16x2xf32>
    %49 = vector.broadcast %47 : vector<1x2xf32> to vector<16x2xf32>
    %50 = arith.mulf %48, %49 : vector<16x2xf32>
    %51 = arith.addf %45, %50 : vector<16x2xf32>
    %52 = vector.extract_strided_slice %20 {offsets = [0, 5], sizes = [16, 1], strides = [1, 1]} : vector<16x10xf32> to vector<16x1xf32>
    %53 = vector.extract_strided_slice %4 {offsets = [5, 0], sizes = [1, 2], strides = [1, 1]} : vector<10x2xf32> to vector<1x2xf32>
    %54 = vector.broadcast %52 : vector<16x1xf32> to vector<16x2xf32>
    %55 = vector.broadcast %53 : vector<1x2xf32> to vector<16x2xf32>
    %56 = arith.mulf %54, %55 : vector<16x2xf32>
    %57 = arith.addf %51, %56 : vector<16x2xf32>
    %58 = vector.extract_strided_slice %20 {offsets = [0, 6], sizes = [16, 1], strides = [1, 1]} : vector<16x10xf32> to vector<16x1xf32>
    %59 = vector.extract_strided_slice %4 {offsets = [6, 0], sizes = [1, 2], strides = [1, 1]} : vector<10x2xf32> to vector<1x2xf32>
    %60 = vector.broadcast %58 : vector<16x1xf32> to vector<16x2xf32>
    %61 = vector.broadcast %59 : vector<1x2xf32> to vector<16x2xf32>
    %62 = arith.mulf %60, %61 : vector<16x2xf32>
    %63 = arith.addf %57, %62 : vector<16x2xf32>
    %64 = vector.extract_strided_slice %20 {offsets = [0, 7], sizes = [16, 1], strides = [1, 1]} : vector<16x10xf32> to vector<16x1xf32>
    %65 = vector.extract_strided_slice %4 {offsets = [7, 0], sizes = [1, 2], strides = [1, 1]} : vector<10x2xf32> to vector<1x2xf32>
    %66 = vector.broadcast %64 : vector<16x1xf32> to vector<16x2xf32>
    %67 = vector.broadcast %65 : vector<1x2xf32> to vector<16x2xf32>
    %68 = arith.mulf %66, %67 : vector<16x2xf32>
    %69 = arith.addf %63, %68 : vector<16x2xf32>
    %70 = vector.extract_strided_slice %20 {offsets = [0, 8], sizes = [16, 1], strides = [1, 1]} : vector<16x10xf32> to vector<16x1xf32>
    %71 = vector.extract_strided_slice %4 {offsets = [8, 0], sizes = [1, 2], strides = [1, 1]} : vector<10x2xf32> to vector<1x2xf32>
    %72 = vector.broadcast %70 : vector<16x1xf32> to vector<16x2xf32>
    %73 = vector.broadcast %71 : vector<1x2xf32> to vector<16x2xf32>
    %74 = arith.mulf %72, %73 : vector<16x2xf32>
    %75 = arith.addf %69, %74 : vector<16x2xf32>
    %76 = vector.extract_strided_slice %20 {offsets = [0, 9], sizes = [16, 1], strides = [1, 1]} : vector<16x10xf32> to vector<16x1xf32>
    %77 = vector.extract_strided_slice %4 {offsets = [9, 0], sizes = [1, 2], strides = [1, 1]} : vector<10x2xf32> to vector<1x2xf32>
    %78 = vector.broadcast %76 : vector<16x1xf32> to vector<16x2xf32>
    %79 = vector.broadcast %77 : vector<1x2xf32> to vector<16x2xf32>
    %80 = arith.mulf %78, %79 : vector<16x2xf32>
    %81 = arith.addf %75, %80 : vector<16x2xf32>
    %c0_3 = arith.constant 0 : index
    %c0_4 = arith.constant 0 : index
    %82 = vector.load %arg2[%c0_3, %c0_4] : memref<16x2xf32, #tpu.memory_space<vmem>>, vector<16x2xf32>
    tpu.vector_store %arg2[%c0_3, %c0_4], %81 {strides = array<i32>} : memref<16x2xf32, #tpu.memory_space<vmem>>, vector<16x2xf32>,
    return
  }
}

</mosaic_0001>

<bundles_post_ra>
// kernel: tpu_custom_call.1
= control target key start
LH: loop header
LB: loop body
LE: loop exit
PB: predicated region body
PF: predicated region fallthrough
CT: control target
= control target key end

     0   :  { %v257_v0 = vmov 1   ;;  %v258_v1 = vmov 0   ;;  %v25_v4 = vlaneseq  ;;  %v259_v27 = vmov 2   ;;  %s332_s0 = inlined_call_operand.vmem [shape: f32[16,2], index: 0, kind: input, shape index: {}]   ;;  %s333_s1 = inlined_call_operand.vmem [shape: f32[14,10], index: 1, kind: input, shape index: {}]   ;;  %s334_s2 = inlined_call_operand.vmem [shape: f32[16,2], index: 2, kind: output, shape index: {}]  }
   0x1   :  { %239 = vset.pattern.permute.xlu1 %v257_v0  ;;  %238 = vset.pattern.permute.xlu0 %v258_v1  ;;  %v11_v2 = vld [vmem:[%s332_s0] sm:$0xff]  ;;  %v12_v3 = vld [vmem:[%s332_s0 + $0x8] sm:$0xff]  ;;  %v260_v28 = vmov 4   ;;  %v261_v29 = vmov 3   ;;  %v262_v30 = vmov 5   ;;  %v263_v31 = vmov 7  }
   0x2   :  { %38 = vperm.xlu1 %239, %v11_v2   ;;  %17 = vperm.xlu0 %238, %v11_v2   ;;  %v288_v5 = vshrl.u32 %v25_v4, 7  ;;  %v295_v8 = vld [vmem:[%s333_s1] sm:$0xff]  ;;  %v264_v32 = vmov 8   ;;  %v265_v33 = vmov 9   ;;  %v266_v34 = vmov 6  }
   0x3   :  { %v14_v47 = vld [vmem:[%s333_s1 + $0x8] sm:$0x3f]  ;;  %vm221_vm0 = vcmask 15360  }
   0x4   :  { %v47_v6 = vsub.s32 1, %v288_v5  ;;  %v27_v7 = vsub.s32 0, %v288_v5  ;;  %v33_v9 = vsub.s32 2, %v288_v5  ;;  %v67_v41 = vsub.s32 3, %v288_v5 }
   0x5   :  { %v87_v43 = vsub.s32 4, %v288_v5  ;;  %v73_v46 = vsub.s32 5, %v288_v5  ;;  %v119_v49 = vsub.s32 6, %v288_v5  ;;  %v135_v61 = vsub.s32 7, %v288_v5 }
   0x6   :  { %42 = vperm.xlu1 %239, %v12_v3   ;;  %22 = vperm.xlu0 %238, %v12_v3   ;;  %v48_v10 = vrot.slane %v295_v8, %v47_v6  ;;  %v28_v11 = vrot.slane %v295_v8, %v27_v7  ;;  %v34_v12 = vrot.slane %v295_v8, %v33_v9 }
   0x7   :  { %v68_v45 = vrot.slane %v295_v8, %v67_v41  ;;  %v88_v48 = vrot.slane %v295_v8, %v87_v43  ;;  %v74_v52 = vrot.slane %v14_v47, %v73_v46  ;;  %v104_v56 = vrot.slane %v295_v8, %v73_v46 }
   0x8   :  { %v120_v57 = vrot.slane %v295_v8, %v119_v49 }
   0xa   :  { %240 = vset.pattern.permute.xlu1 %v258_v1 }
  0x81   :  { %v39_v13 = vpop.permute.xlu1 %38  ;;  %v18_v14 = vpop.permute.xlu0 %17 }
  0x82   :  { %v49_v15 = vmul.f32 %v48_v10, %v39_v13  ;;  %v29_v16 = vmul.f32 %v28_v11, %v18_v14  ;;  %v152_v14 = vrot.slane %v14_v47, %v27_v7 }
  0x84   :  { %v35_v17 = vadd.f32 %v34_v12, %v29_v16  ;;  %v168_v16 = vrot.slane %v14_v47, %v47_v6 }
  0x85   :  { %v43_v18 = vpop.permute.xlu1 %42  ;;  %v23_v19 = vpop.permute.xlu0 %22 }
  0x86   :  { %v51_v20 = vadd.f32 %v49_v15, %v35_v17  ;;  %v30_v21 = vmul.f32 %v28_v11, %v23_v19  ;;  %v50_v23 = vmul.f32 %v48_v10, %v43_v18  ;;  %v136_v11 = vrot.slane %v295_v8, %v135_v61 }
  0x87   :  { %v184_v8 = vrot.slane %v14_v47, %v33_v9 }
  0x88   :  { %v53_v22 = vmax.f32 %v51_v20, 0.0  ;;  %v36_v24 = vadd.f32 %v34_v12, %v30_v21 }
  0x8a   :  { %v52_v25 = vadd.f32 %v50_v23, %v36_v24  ;;  %57 = vperm.xlu0 %238, %v53_v22  }
  0x8c   :  { %v54_v26 = vmax.f32 %v52_v25, 0.0 }
  0x8e   :  { %241 = vset.pattern.permute.xlu0 %v257_v0  ;;  %62 = vperm.xlu1 %240, %v54_v26  }
  0x8f   :  { %78 = vperm.xlu0 %241, %v53_v22  }
  0x92   :  { %242 = vset.pattern.permute.xlu1 %v257_v0 }
  0x93   :  { %244 = vset.pattern.permute.xlu0 %v259_v27  ;;  %82 = vperm.xlu1 %242, %v54_v26  }
  0x94   :  { %98 = vperm.xlu0 %244, %v54_v26  }
  0x97   :  { %243 = vset.pattern.permute.xlu1 %v259_v27 }
  0x98   :  { %246 = vset.pattern.permute.xlu0 %v260_v28  ;;  %94 = vperm.xlu1 %243, %v53_v22  }
  0x99   :  { %126 = vperm.xlu0 %246, %v53_v22  }
  0x9c   :  { %245 = vset.pattern.permute.xlu1 %v261_v29  ;;  %v200_v29 = vrot.slane %v14_v47, %v67_v41 }
  0x9d   :  { %249 = vset.pattern.permute.xlu0 %v262_v30  ;;  %110 = vperm.xlu1 %245, %v53_v22  }
  0x9e   :  { %146 = vperm.xlu0 %249, %v54_v26  }
  0xa1   :  { %114 = vperm.xlu1 %245, %v54_v26  }
  0xa2   :  { %251 = vset.pattern.permute.xlu0 %v263_v31 }
  0xa3   :  { %174 = vperm.xlu0 %251, %v53_v22  }
  0xa5   :  { %247 = vset.pattern.permute.xlu1 %v260_v28 }
  0xa6   :  { %130 = vperm.xlu1 %247, %v54_v26  }
  0xa7   :  { %254 = vset.pattern.permute.xlu0 %v264_v32 }
  0xa8   :  { %194 = vperm.xlu0 %254, %v54_v26  }
  0xaa   :  { %248 = vset.pattern.permute.xlu1 %v262_v30 }
  0xab   :  { %142 = vperm.xlu1 %248, %v53_v22  }
  0xac   :  { %256 = vset.pattern.permute.xlu0 %v265_v33 }
  0xaf   :  { %250 = vset.pattern.permute.xlu1 %v266_v34 }
  0xb0   :  { %158 = vperm.xlu1 %250, %v53_v22  }
  0xb4   :  { %162 = vperm.xlu1 %250, %v54_v26  }
  0xb8   :  { %252 = vset.pattern.permute.xlu1 %v263_v31 }
  0xb9   :  { %178 = vperm.xlu1 %252, %v54_v26  }
  0xbd   :  { %253 = vset.pattern.permute.xlu1 %v264_v32  ;;  %v216_v32 = vrot.slane %v14_v47, %v87_v43 }
  0xbe   :  { %190 = vperm.xlu1 %253, %v53_v22  }
  0xc2   :  { %255 = vset.pattern.permute.xlu1 %v265_v33 }
  0xc3   :  { %206 = vperm.xlu1 %255, %v53_v22  }
  0xc7   :  { %210 = vperm.xlu1 %255, %v54_v26  }
 0x109   :  { %v58_v39 = vpop.permute.xlu0 %57 }
 0x10a   :  { %v69_v53 = vmul.f32 %v68_v45, %v58_v39 }
 0x10c   :  { %v75_v58 = vadd.f32 %v74_v52, %v69_v53 }
 0x10d   :  { %v63_v35 = vpop.permute.xlu1 %62 }
 0x10e   :  { %v79_v42 = vpop.permute.xlu0 %78  ;;  %v70_v54 = vmul.f32 %v68_v45, %v63_v35 }
 0x10f   :  { %v89_v55 = vmul.f32 %v88_v48, %v79_v42 }
 0x110   :  { %v76_v0 = vadd.f32 %v74_v52, %v70_v54 }
 0x111   :  { %v91_v1 = vadd.f32 %v89_v55, %v75_v58 }
 0x112   :  { %v83_v36 = vpop.permute.xlu1 %82 }
 0x113   :  { %v99_v50 = vpop.permute.xlu0 %98  ;;  %v90_v59 = vmul.f32 %v88_v48, %v83_v36 }
 0x114   :  { %v106_v4 = vmul.f32 %v104_v56, %v99_v50 }
 0x115   :  { %v92_v3 = vadd.f32 %v90_v59, %v76_v0 }
 0x117   :  { %v95_v37 = vpop.permute.xlu1 %94  ;;  %v108_v18 = vadd.f32 %v106_v4, %v92_v3 }
 0x118   :  { %v105_v60 = vmul.f32 %v104_v56, %v95_v37  ;;  %v127_v63 = vpop.permute.xlu0 %126 }
 0x119   :  { %v137_v19 = vmul.f32 %v136_v11, %v127_v63 }
 0x11a   :  { %v107_v10 = vadd.f32 %v105_v60, %v91_v1 }
 0x11c   :  { %v111_v38 = vpop.permute.xlu1 %110 }
 0x11d   :  { %v121_v2 = vmul.f32 %v120_v57, %v111_v38  ;;  %v147_v17 = vpop.permute.xlu0 %146 }
 0x11e   :  { %v154_v7 = vmul.f32 %v152_v14, %v147_v17 }
 0x11f   :  { %v123_v13 = vadd.f32 %v121_v2, %v107_v10 }
 0x120   :  { %v115_v40 = vpop.permute.xlu1 %114 }
 0x121   :  { %v122_v15 = vmul.f32 %v120_v57, %v115_v40  ;;  %v139_v24 = vadd.f32 %v137_v19, %v123_v13 }
 0x122   :  { %v175_v28 = vpop.permute.xlu0 %174 }
 0x123   :  { %v124_v23 = vadd.f32 %v122_v15, %v108_v18  ;;  %v185_v33 = vmul.f32 %v184_v8, %v175_v28 }
 0x125   :  { %v131_v44 = vpop.permute.xlu1 %130 }
 0x126   :  { %v138_v20 = vmul.f32 %v136_v11, %v131_v44 }
 0x127   :  { %v195_v39 = vpop.permute.xlu0 %194 }
 0x128   :  { %v140_v26 = vadd.f32 %v138_v20, %v124_v23  ;;  %v202_v44 = vmul.f32 %v200_v29, %v195_v39 }
 0x12a   :  { %v143_v51 = vpop.permute.xlu1 %142  ;;  %v156_v34 = vadd.f32 %v154_v7, %v140_v26 }
 0x12b   :  { %v153_v21 = vmul.f32 %v152_v14, %v143_v51 }
 0x12d   :  { %v155_v27 = vadd.f32 %v153_v21, %v139_v24 }
 0x12f   :  { %v159_v62 = vpop.permute.xlu1 %158 }
 0x130   :  { %v169_v25 = vmul.f32 %v168_v16, %v159_v62 }
 0x132   :  { %v171_v30 = vadd.f32 %v169_v25, %v155_v27 }
 0x133   :  { %v163_v12 = vpop.permute.xlu1 %162 }
 0x134   :  { %v170_v31 = vmul.f32 %v168_v16, %v163_v12  ;;  %v187_v38 = vadd.f32 %v185_v33, %v171_v30 }
 0x136   :  { %v172_v37 = vadd.f32 %v170_v31, %v156_v34 }
 0x138   :  { %v179_v22 = vpop.permute.xlu1 %178 }
 0x139   :  { %v186_v35 = vmul.f32 %v184_v8, %v179_v22 }
 0x13b   :  { %v188_v42 = vadd.f32 %v186_v35, %v172_v37 }
 0x13d   :  { %v191_v6 = vpop.permute.xlu1 %190  ;;  %v204_v41 = vadd.f32 %v202_v44, %v188_v42 }
 0x13e   :  { %v201_v36 = vmul.f32 %v200_v29, %v191_v6 }
 0x140   :  { %v203_v5 = vadd.f32 %v201_v36, %v187_v38 }
 0x142   :  { %v207_v40 = vpop.permute.xlu1 %206 }
 0x143   :  { %v217_v9 = vmul.f32 %v216_v32, %v207_v40 }
 0x145   :  { %v219_v45 = vadd.f32 %v217_v9, %v203_v5 }
 0x146   :  { %v211_v46 = vpop.permute.xlu1 %210 }
 0x147   :  { %222 = vst.msk [vmem:[%s334_s2] sm:$0xff] %vm221_vm0, %v219_v45  ;;  %v218_v43 = vmul.f32 %v216_v32, %v211_v46 }
 0x149   :  { %v220_v47 = vadd.f32 %v218_v43, %v204_v41 }
 0x14b   :  { %223 = vst.msk [vmem:[%s334_s2 + $0x8] sm:$0xff] %vm221_vm0, %v220_v47 }

</bundles_post_ra>
